<compile_context>
chip_gen: v7x
topology: tpu7x:2x2x1
jax: 0.10.0
libtpu: 0.0.40
codegen_flags: <defaults>
</compile_context>

<pallas_src>
import functools
import math

import jax
import jax.numpy as jnp
from jax.experimental import pallas as pl
from jax.experimental.pallas import tpu as pltpu

_SELU_ALPHA = 1.6732632423543772
_SELU_SCALE = 1.0507009873554805
_PRELU_ALPHA = 0.25   # nn.PReLU default init.
# TODO(synk): nn.PReLU's alpha is learnable; importing a trained Net_cla
# requires importing the per-layer alpha as well (here we only match default init).
_LRELU_SLOPE = 0.01   # nn.LeakyReLU default negative_slope

_LANE = 128
_MAX_TB = 2048        # max batch-tile rows; VMEM footprint stays << 16 MiB


def _round_up(x: int, m: int) -> int:
    return (x + m - 1) // m * m


def _apply_act(y, act: str):
    if act == "rel":
        return jnp.maximum(y, 0.0)
    if act == "lrel":
        return jnp.where(y > 0.0, y, _LRELU_SLOPE * y)
    if act == "prel":
        return jnp.where(y > 0.0, y, _PRELU_ALPHA * y)
    if act == "sel":
        return _SELU_SCALE * jnp.where(y > 0.0, y, _SELU_ALPHA * jnp.expm1(y))
    if act == "sigmoid":
        return jax.nn.sigmoid(y)
    if act == "none":
        return y
    raise ValueError(f"unknown activation {act!r}")


def _pick_tile(batch: int) -> int:
    """Pick the batch-tile row count.

    Big tiles amortize the fixed per-grid-step pipeline overhead; for batches
    with enough work we keep an EVEN number (>= 2) of grid steps so the
    "parallel" batch axis can shard across v7x's two TensorCores.
    """
    b8 = _round_up(max(batch, 1), 8)
    if b8 <= 256:
        return b8                                # tiny batch: single step
    pairs = -(-b8 // (2 * _MAX_TB))              # ceil division
    tb = _round_up(-(-b8 // (2 * pairs)), 8)     # even number of steps
    return min(tb, _MAX_TB)


# ----------------------------------------------------------------------------
# Fused MLP kernel: all layers (bf16 matmul on MXU, f32 bias + nonlinearity on
# VPU/EUP) execute on one batch tile without leaving VMEM.
# ----------------------------------------------------------------------------
def _make_fused_mlp_kernel(acts, npads):
    n_layers = len(acts)

    def kernel(x_ref, w_ref, b_ref, o_ref):
        h = x_ref[...].astype(jnp.float32)           # (TB, nin0) f32, unpadded lanes
        tb = h.shape[0]
        for i in range(n_layers):                    # statically unrolled
            k = h.shape[1]                           # current (padded) input width
            n = npads[i]                             # padded output width of layer i
            b = b_ref[i, :, :n]                      # (1, n) f32
            if i == 0 and k < 8:
                # Tiny contracting dim (e.g. 4 input masses): cheaper and more
                # robust on the VPU than a heavily masked MXU matmul.
                y = jnp.zeros((tb, n), jnp.float32)
                for c in range(k):
                    y = y + h[:, c:c + 1] * w_ref[0, c:c + 1, :n].astype(jnp.float32)
                y = y + b
            else:
                y = jnp.dot(h.astype(jnp.bfloat16), w_ref[i, :k, :n],
                            preferred_element_type=jnp.float32) + b
            h = _apply_act(y, acts[i])
        o_ref[...] = h.astype(o_ref.dtype)

    return kernel


@functools.partial(jax.jit, static_argnames=("acts", "npads", "out_dim"))
def _net_forward(x, w_stack, b_stack, acts, npads, out_dim):
    B, nin0 = x.shape
    n_layers, kpad_max, npad_max = w_stack.shape
    out_pad = npads[-1]

    tb = _pick_tile(B)
    grid = pl.cdiv(B, tb)                             # partial last block allowed

    kernel = _make_fused_mlp_kernel(acts, npads)
    out = pl.pallas_call(
        kernel,
        out_shape=jax.ShapeDtypeStruct((B, out_pad), jnp.float32),
        grid_spec=pltpu.PrefetchScalarGridSpec(
            num_scalar_prefetch=0,
            grid=(grid,),
            in_specs=[
                # Unpadded activation tile; last dim equals the full array dim.
                pl.BlockSpec((tb, nin0), lambda i: (i, 0)),
                # All layer weights (bf16), VMEM-resident across the whole grid.
                pl.BlockSpec((n_layers, kpad_max, npad_max), lambda i: (0, 0, 0)),
                # All biases (f32) in one small block.
                pl.BlockSpec((n_layers, 1, npad_max), lambda i: (0, 0, 0)),
            ],
            out_specs=pl.BlockSpec((tb, out_pad), lambda i: (i, 0)),
        ),
        compiler_params=pltpu.CompilerParams(
            dimension_semantics=("parallel",),
            vmem_limit_bytes=32 * 1024 * 1024,
        ),
    )(x.astype(jnp.float32), w_stack, b_stack)

    # Padded sigmoid lanes (sigmoid(0) = 0.5) are dropped here.
    return out[:, :out_dim]


# ----------------------------------------------------------------------------
# Net_cla equivalent (trainingMode forward path)
# ----------------------------------------------------------------------------
class NetClaPallas:
    """JAX/Pallas port of Net_cla (trainingMode forward path)."""

    def __init__(self, netShape, activFunc, key):
        self.activFunc = activFunc
        self.netShape = [tuple(s) for s in netShape]
        last = len(self.netShape) - 1

        # Raw parameters in PyTorch Linear convention (W: [nout, nin]).
        self.params = []
        acts = []
        for i, (nin, nout) in enumerate(self.netShape):
            key, wk, bk = jax.random.split(key, 3)
            bound = 1.0 / math.sqrt(nin)   # PyTorch Linear default init range
            w = jax.random.uniform(wk, (nout, nin), jnp.float32, -bound, bound)
            b = jax.random.uniform(bk, (nout,), jnp.float32, -bound, bound)
            self.params.append((w, b))
            if i == last:
                acts.append("sigmoid")
            elif activFunc in ("rel", "prel", "sel", "lrel"):
                acts.append(activFunc)
            else:
                # Matches original Net_cla: unknown activFunc -> no hidden nonlinearity.
                acts.append("none")
        self.acts = tuple(acts)

        # Padded, pre-transposed, stacked parameters for the fused kernel.
        kpad_max = max(_round_up(nin, _LANE) for nin, _ in self.netShape)
        npad_max = max(_round_up(nout, _LANE) for _, nout in self.netShape)
        self.npads = tuple(_round_up(nout, _LANE) for _, nout in self.netShape)
        n_layers = len(self.netShape)
        w_stack = jnp.zeros((n_layers, kpad_max, npad_max), jnp.float32)
        b_stack = jnp.zeros((n_layers, 1, npad_max), jnp.float32)
        for i, (w, b) in enumerate(self.params):
            nout, nin = w.shape
            w_stack = w_stack.at[i, :nin, :nout].set(w.T)   # [nin, nout] layout
            b_stack = b_stack.at[i, 0, :nout].set(b)
        # bf16 weights: halves weight HBM/VMEM bytes, native MXU dtype on all
        # generations; bias/activation math stays f32.
        self.w_stack = w_stack.astype(jnp.bfloat16)
        self.b_stack = b_stack
        self.out_dim = self.netShape[-1][1]

    def __call__(self, x):
        # trainingMode == True path: no input rescaling, no delimiter threshold.
        # TODO(synk): the non-trainingMode sklearn-scaler rescale + delimiter
        # thresholding is host-side numpy glue, intentionally not in the kernel.
        return _net_forward(x, self.w_stack, self.b_stack, self.acts,
                            self.npads, self.out_dim)


# Pure-JAX reference (mirrors the kernel's bf16 weight rounding) for sanity checks.
def _reference(net, x):
    h = x.astype(jnp.float32)
    for i, ((w, b), act) in enumerate(zip(net.params, net.acts)):
        wt = w.T.astype(jnp.bfloat16).astype(jnp.float32)   # bf16-rounded weights
        if i == 0 and w.shape[1] < 8:
            lhs = h                                          # kernel keeps f32 here
        else:
            lhs = h.astype(jnp.bfloat16).astype(jnp.float32)
        y = jnp.dot(lhs, wt, precision=jax.lax.Precision.HIGHEST) + b
        h = _apply_act(y, act)
    return h


if __name__ == "__main__":
    key = jax.random.PRNGKey(0)
    key, xkey, xkey2 = jax.random.split(key, 3)

    # Small classification net: 4 input masses -> 32 -> 32 -> 1 (sigmoid out).
    netShape = [(4, 32), (32, 32), (32, 1)]
    activFunc = "rel"

    net = NetClaPallas(netShape, activFunc, key)

    # Small-batch check (single grid step).
    x = jax.random.normal(xkey, (8, 4), dtype=jnp.float32)
    out = jax.block_until_ready(net(x))
    ref = _reference(net, x)
    assert out.shape == (8, 1)
    assert jnp.allclose(out, ref, atol=2e-2), float(jnp.max(jnp.abs(out - ref)))

    # Larger batch: 2-step "parallel" grid + partial last block (no batch padding).
    x2 = jax.random.normal(xkey2, (777, 4), dtype=jnp.float32)
    out2 = jax.block_until_ready(net(x2))
    ref2 = _reference(net, x2)
    assert out2.shape == (777, 1)
    assert jnp.allclose(out2, ref2, atol=2e-2), float(jnp.max(jnp.abs(out2 - ref2)))

    print("KERNEL_OK")
</pallas_src>

<mosaic_0001>
module attributes {stable_mosaic.version = 11 : i64} {
  func.func @kernel(%arg0: i32, %arg1: memref<8x4xf32, #tpu.memory_space<vmem>>, %arg2: memref<3x128x128xbf16, #tpu.memory_space<vmem>>, %arg3: memref<3x1x128xf32, #tpu.memory_space<vmem>>, %arg4: memref<8x128xf32, #tpu.memory_space<vmem>>) attributes {dimension_semantics = [#tpu.dimension_semantics<parallel>], iteration_bounds = array<i64: 1>, scalar_prefetch = 0 : i64, scratch_operands = 0 : i64, tpu.core_type = #tpu.core_type<tc>, window_params = [{transform_indices = @transform_0, window_bounds = array<i64: 8, 4>}, {pipeline_mode = #tpu.pipeline_mode<synchronous>, transform_indices = @transform_1, window_bounds = array<i64: 3, 128, 128>}, {pipeline_mode = #tpu.pipeline_mode<synchronous>, transform_indices = @transform_2, window_bounds = array<i64: 3, 1, 128>}, {transform_indices = @transform_3, window_bounds = array<i64: 8, 128>}]} {
    %c0 = arith.constant 0 : index
    %c0_0 = arith.constant 0 : index
    %0 = vector.load %arg1[%c0, %c0_0] : memref<8x4xf32, #tpu.memory_space<vmem>>, vector<8x4xf32>
    %c0_1 = arith.constant 0 : index
    %c0_2 = arith.constant 0 : index
    %c0_3 = arith.constant 0 : index
    %1 = vector.load %arg3[%c0_1, %c0_2, %c0_3] : memref<3x1x128xf32, #tpu.memory_space<vmem>>, vector<1x1x128xf32>
    %2 = vector.shape_cast %1 : vector<1x1x128xf32> to vector<1x128xf32>
    %cst = arith.constant 0.000000e+00 : f32
    %3 = vector.broadcast %cst : f32 to vector<8x128xf32>
    %4 = vector.extract_strided_slice %0 {offsets = [0, 0], sizes = [8, 1], strides = [1, 1]} : vector<8x4xf32> to vector<8x1xf32>
    %c0_4 = arith.constant 0 : index
    %c0_5 = arith.constant 0 : index
    %c0_6 = arith.constant 0 : index
    %5 = vector.load %arg2[%c0_4, %c0_5, %c0_6] : memref<3x128x128xbf16, #tpu.memory_space<vmem>>, vector<1x1x128xbf16>
    %6 = vector.shape_cast %5 : vector<1x1x128xbf16> to vector<1x128xbf16>
    %7 = arith.extf %6 : vector<1x128xbf16> to vector<1x128xf32>
    %8 = vector.broadcast %4 : vector<8x1xf32> to vector<8x128xf32>
    %9 = vector.broadcast %7 : vector<1x128xf32> to vector<8x128xf32>
    %10 = arith.mulf %8, %9 : vector<8x128xf32>
    %11 = arith.addf %3, %10 : vector<8x128xf32>
    %12 = vector.extract_strided_slice %0 {offsets = [0, 1], sizes = [8, 1], strides = [1, 1]} : vector<8x4xf32> to vector<8x1xf32>
    %c0_7 = arith.constant 0 : index
    %c1 = arith.constant 1 : index
    %c0_8 = arith.constant 0 : index
    %13 = vector.load %arg2[%c0_7, %c1, %c0_8] : memref<3x128x128xbf16, #tpu.memory_space<vmem>>, vector<1x1x128xbf16>
    %14 = vector.shape_cast %13 : vector<1x1x128xbf16> to vector<1x128xbf16>
    %15 = arith.extf %14 : vector<1x128xbf16> to vector<1x128xf32>
    %16 = vector.broadcast %12 : vector<8x1xf32> to vector<8x128xf32>
    %17 = vector.broadcast %15 : vector<1x128xf32> to vector<8x128xf32>
    %18 = arith.mulf %16, %17 : vector<8x128xf32>
    %19 = arith.addf %11, %18 : vector<8x128xf32>
    %20 = vector.extract_strided_slice %0 {offsets = [0, 2], sizes = [8, 1], strides = [1, 1]} : vector<8x4xf32> to vector<8x1xf32>
    %c0_9 = arith.constant 0 : index
    %c2 = arith.constant 2 : index
    %c0_10 = arith.constant 0 : index
    %21 = vector.load %arg2[%c0_9, %c2, %c0_10] : memref<3x128x128xbf16, #tpu.memory_space<vmem>>, vector<1x1x128xbf16>
    %22 = vector.shape_cast %21 : vector<1x1x128xbf16> to vector<1x128xbf16>
    %23 = arith.extf %22 : vector<1x128xbf16> to vector<1x128xf32>
    %24 = vector.broadcast %20 : vector<8x1xf32> to vector<8x128xf32>
    %25 = vector.broadcast %23 : vector<1x128xf32> to vector<8x128xf32>
    %26 = arith.mulf %24, %25 : vector<8x128xf32>
    %27 = arith.addf %19, %26 : vector<8x128xf32>
    %28 = vector.extract_strided_slice %0 {offsets = [0, 3], sizes = [8, 1], strides = [1, 1]} : vector<8x4xf32> to vector<8x1xf32>
    %c0_11 = arith.constant 0 : index
    %c3 = arith.constant 3 : index
    %c0_12 = arith.constant 0 : index
    %29 = vector.load %arg2[%c0_11, %c3, %c0_12] : memref<3x128x128xbf16, #tpu.memory_space<vmem>>, vector<1x1x128xbf16>
    %30 = vector.shape_cast %29 : vector<1x1x128xbf16> to vector<1x128xbf16>
    %31 = arith.extf %30 : vector<1x128xbf16> to vector<1x128xf32>
    %32 = vector.broadcast %28 : vector<8x1xf32> to vector<8x128xf32>
    %33 = vector.broadcast %31 : vector<1x128xf32> to vector<8x128xf32>
    %34 = arith.mulf %32, %33 : vector<8x128xf32>
    %35 = arith.addf %27, %34 : vector<8x128xf32>
    %36 = vector.broadcast %2 : vector<1x128xf32> to vector<8x128xf32>
    %37 = arith.addf %35, %36 : vector<8x128xf32>
    %cst_13 = arith.constant 0.000000e+00 : f32
    %38 = vector.broadcast %cst_13 : f32 to vector<8x128xf32>
    %39 = arith.maximumf %37, %38 : vector<8x128xf32>
    %c1_14 = arith.constant 1 : index
    %c0_15 = arith.constant 0 : index
    %c0_16 = arith.constant 0 : index
    %40 = vector.load %arg3[%c1_14, %c0_15, %c0_16] : memref<3x1x128xf32, #tpu.memory_space<vmem>>, vector<1x1x128xf32>
    %41 = vector.shape_cast %40 : vector<1x1x128xf32> to vector<1x128xf32>
    %42 = arith.truncf %39 : vector<8x128xf32> to vector<8x128xbf16>
    %c1_17 = arith.constant 1 : index
    %c0_18 = arith.constant 0 : index
    %c0_19 = arith.constant 0 : index
    %43 = vector.load %arg2[%c1_17, %c0_18, %c0_19] : memref<3x128x128xbf16, #tpu.memory_space<vmem>>, vector<1x128x128xbf16>
    %44 = vector.shape_cast %43 : vector<1x128x128xbf16> to vector<128x128xbf16>
    %cst_20 = arith.constant dense<0.000000e+00> : vector<8x128xf32>
    %45 = tpu.matmul %42, %44, %cst_20 {dimension_numbers = #tpu.dot_dimension_numbers<[1], [0], [0], [1], [0, 0, 1, 1], [], []>} : vector<8x128xbf16>, vector<128x128xbf16>, vector<8x128xf32> -> vector<8x128xf32>
    %46 = vector.broadcast %41 : vector<1x128xf32> to vector<8x128xf32>
    %47 = arith.addf %45, %46 : vector<8x128xf32>
    %cst_21 = arith.constant 0.000000e+00 : f32
    %48 = vector.broadcast %cst_21 : f32 to vector<8x128xf32>
    %49 = arith.maximumf %47, %48 : vector<8x128xf32>
    %c2_22 = arith.constant 2 : index
    %c0_23 = arith.constant 0 : index
    %c0_24 = arith.constant 0 : index
    %50 = vector.load %arg3[%c2_22, %c0_23, %c0_24] : memref<3x1x128xf32, #tpu.memory_space<vmem>>, vector<1x1x128xf32>
    %51 = vector.shape_cast %50 : vector<1x1x128xf32> to vector<1x128xf32>
    %52 = arith.truncf %49 : vector<8x128xf32> to vector<8x128xbf16>
    %c2_25 = arith.constant 2 : index
    %c0_26 = arith.constant 0 : index
    %c0_27 = arith.constant 0 : index
    %53 = vector.load %arg2[%c2_25, %c0_26, %c0_27] : memref<3x128x128xbf16, #tpu.memory_space<vmem>>, vector<1x128x128xbf16>
    %54 = vector.shape_cast %53 : vector<1x128x128xbf16> to vector<128x128xbf16>
    %cst_28 = arith.constant dense<0.000000e+00> : vector<8x128xf32>
    %55 = tpu.matmul %52, %54, %cst_28 {dimension_numbers = #tpu.dot_dimension_numbers<[1], [0], [0], [1], [0, 0, 1, 1], [], []>} : vector<8x128xbf16>, vector<128x128xbf16>, vector<8x128xf32> -> vector<8x128xf32>
    %56 = vector.broadcast %51 : vector<1x128xf32> to vector<8x128xf32>
    %57 = arith.addf %55, %56 : vector<8x128xf32>
    %58 = arith.negf %57 : vector<8x128xf32>
    %59 = math.exp %58 : vector<8x128xf32>
    %cst_29 = arith.constant 1.000000e+00 : f32
    %60 = vector.broadcast %cst_29 : f32 to vector<8x128xf32>
    %61 = arith.addf %60, %59 : vector<8x128xf32>
    %62 = arith.divf %60, %61 : vector<8x128xf32>
    %c0_30 = arith.constant 0 : index
    %c0_31 = arith.constant 0 : index
    %63 = vector.load %arg4[%c0_30, %c0_31] : memref<8x128xf32, #tpu.memory_space<vmem>>, vector<8x128xf32>
    tpu.vector_store %arg4[%c0_30, %c0_31], %62 {strides = array<i32>} : memref<8x128xf32, #tpu.memory_space<vmem>>, vector<8x128xf32>,
    return
  }
  func.func @transform_0(%arg0: i32) -> (i32, i32) {
    %c0_i32 = arith.constant 0 : i32
    %c0_i32_0 = arith.constant 0 : i32
    return %arg0, %c0_i32 : i32, i32
  }
  func.func @transform_1(%arg0: i32) -> (i32, i32, i32) {
    %c0_i32 = arith.constant 0 : i32
    %c0_i32_0 = arith.constant 0 : i32
    %c0_i32_1 = arith.constant 0 : i32
    %c0_i32_2 = arith.constant 0 : i32
    return %c0_i32, %c0_i32_0, %c0_i32_1 : i32, i32, i32
  }
  func.func @transform_2(%arg0: i32) -> (i32, i32, i32) {
    %c0_i32 = arith.constant 0 : i32
    %c0_i32_0 = arith.constant 0 : i32
    %c0_i32_1 = arith.constant 0 : i32
    %c0_i32_2 = arith.constant 0 : i32
    return %c0_i32, %c0_i32_0, %c0_i32_1 : i32, i32, i32
  }
  func.func @transform_3(%arg0: i32) -> (i32, i32) {
    %c0_i32 = arith.constant 0 : i32
    %c0_i32_0 = arith.constant 0 : i32
    return %arg0, %c0_i32 : i32, i32
  }
}

</mosaic_0001>

<bundles_post_ra>
// kernel: _net_forward.1
= control target key start
LH: loop header
LB: loop body
LE: loop exit
PB: predicated region body
PF: predicated region fallthrough
CT: control target
= control target key end

     0   :  { %8 = vsyncpa [#allocation3], 0  ;;  %s463_s12 = smov [#allocation2]   ;;  %s537_s0 = inlined_call_operand.vmem [shape: f32[8,4], index: 0, kind: input, shape index: {}]   ;;  %s538_s1 = inlined_call_operand.hbm [shape: bf16[3,128,128], index: 1, kind: input, shape index: {}]   ;;  %s539_s2 = inlined_call_operand.vmem [shape: f32[3,1,128], index: 2, kind: input, shape index: {}]   ;;  %s540_s3 = inlined_call_operand.vmem [shape: f32[8,128], index: 3, kind: output, shape index: {}]  }
   0x1   :  { %s16_s13 = sshll.u32 %s463_s12, 4  ;;  %s439_s16 = scalar_lea.hbm %s538_s1, 3072  ;;  %s17_s13 = int_to_ptr.vmem [resolvable:$true] %s16_s13 }
   0x2   :  { %p440_p0 = scmp.ne.s32.totalorder %s538_s1, %s439_s16  ;;  %p443_p1 = scmp.lt.u32.totalorder %s439_s16, %s538_s1 }
   0x4   :  { %p445_p2 = pnand %p443_p1, %p440_p0 }
   0x6   :  { %448 = shalt.err (!%p445_p2)
}
   0x7   :  { %s449_s21 = scalar_lea.vmem %s17_s13, 3072  ;;  %p454_p4 = scmp.lt.s32.totalorder %s17_s13, %s17_s13 }
   0x8   :  { %p450_p3 = scmp.ne.s32.totalorder %s17_s13, %s449_s21  ;;  %p455_p5 = scmp.lt.s32.totalorder %s449_s21, %s449_s21 }
   0xa   :  { %p456_p6 = por %p455_p5, %p454_p4 }
   0xc   :  { %p457_p7 = pnand %p456_p6, %p450_p3 }
   0xe   :  { %460 = shalt.err (!%p457_p7)
}
   0xf   :  { %s464_s22 = smov 64   ;;  %s465_s23 = smov 4  }
  0x10   :  { %22 = dma.hbm_to_vmem [thread:$0]  %s538_s1, 3072, %s17_s13, [#allocation3], %s464_s22, %s464_s22, %s465_s23  }
  0x11   :  { %461 = dma.done.wait [#allocation3], 3072  }
  0x12   :  { %462 = vsyncadd [#allocation3], 4294964224  ;;  %v466_v0 = vmov 0   ;;  %v467_v1 = vmov 2   ;;  %v468_v2 = vmov 0.0   ;;  %v29_v3 = vld [vmem:[%s537_s0] sm:$0xff]  ;;  %v38_v20 = vlaneseq }
  0x13   :  { %414 = vset.pattern.permute.xlu0 %v466_v0  ;;  %416 = vset.pattern.permute.xlu1 %v467_v1  ;;  %v419_v4 = vld [vmem:[#allocation2 + $0x40] sm:$0xff]   ;;  %v420_v5 = vld [vmem:[#allocation2 + $0x48] sm:$0xff]   ;;  %v469_v6 = vmov 1   ;;  %v470_v7 = vmov 3   ;;  %v421_v8 = vld [vmem:[#allocation2 + $0x50] sm:$0xff]   ;;  %vm471_vm0 = vmmov 0  }
  0x14   :  { %365 = vmatprep.subr.bf16.mxu0 %v468_v2  ;;  %385 = vmatprep.subr.bf16.mxu1 %v468_v2  ;;  %v422_v9 = vld [vmem:[#allocation2 + $0x58] sm:$0xff]   ;;  %v423_v10 = vld [vmem:[#allocation2 + $0x60] sm:$0xff]   ;;  %v424_v11 = vld [vmem:[#allocation2 + $0x68] sm:$0xff]   ;;  %v39_v21 = vshrl.u32 %v38_v20, 7 }
  0x15   :  { %35 = vperm.xlu0 %414, %v29_v3   ;;  %57 = vperm.xlu1 %416, %v29_v3   ;;  %v427_v12 = vld [vmem:[#allocation2 + $0x80] sm:$0xff]   ;;  %v428_v13 = vld [vmem:[#allocation2 + $0x88] sm:$0xff]   ;;  %v425_v14 = vld [vmem:[#allocation2 + $0x70] sm:$0xff]  }
  0x16   :  { %366 = vmatpush3.bf16.msra.mxu0 %v419_v4  ;;  %381 = vmatprep.mubr.msk.bf16.mxu0 %vm471_vm0, %v468_v2  ;;  %v429_v15 = vld [vmem:[#allocation2 + $0x90] sm:$0xff]   ;;  %v426_v16 = vld [vmem:[#allocation2 + $0x78] sm:$0xff]   ;;  %v431_v18 = vld [vmem:[#allocation2 + $0xa0] sm:$0xff]   ;;  %v40_v25 = vsub.s32 0, %v39_v21  ;;  %v50_v26 = vsub.s32 1, %v39_v21  ;;  %v62_v29 = vsub.s32 2, %v39_v21 }
  0x17   :  { %367 = vmatprep.subr.bf16.mxu0 %v468_v2  ;;  %401 = vmatprep.mubr.msk.bf16.mxu1 %vm471_vm0, %v468_v2  ;;  %v430_v17 = vld [vmem:[#allocation2 + $0x98] sm:$0xff]   ;;  %v432_v19 = vld [vmem:[#allocation2 + $0xa8] sm:$0xff]   ;;  %v31_v22 = vld [vmem:[#allocation2] sm:$0x1]  ;;  %v72_v31 = vsub.s32 3, %v39_v21 }
  0x18   :  { %386 = vmatpush3.bf16.msra.mxu1 %v427_v12  ;;  %v54_v23 = vld [vmem:[#allocation2] sm:$0x2]  ;;  %v32_v24 = vunpack.c.l.bf16 %v31_v22  ;;  %v325_v44 = vld [vmem:[%s539_s2] ss:$0 sm:$0xff]  ;;  %v433_v49 = vld [vmem:[#allocation2 + $0xb0] sm:$0xff]  }
  0x19   :  { %415 = vset.pattern.permute.xlu0 %v469_v6  ;;  %417 = vset.pattern.permute.xlu1 %v470_v7  ;;  %v55_v28 = vunpack.c.l.bf16 %v54_v23  ;;  %v434_v50 = vld [vmem:[#allocation2 + $0xb8] sm:$0xff]   ;;  %v327_v51 = vld [vmem:[%s539_s2 + $0x1] ss:$0 sm:$0xff]  ;;  %v337_v59 = vld [vmem:[%s539_s2 + $0x2] ss:$0 sm:$0xff] }
  0x1a   :  { %45 = vperm.xlu0 %415, %v29_v3   ;;  %67 = vperm.xlu1 %417, %v29_v3   ;;  %v41_v32 = vrot.slane %v32_v24, %v40_v25  ;;  %v51_v33 = vrot.slane %v32_v24, %v50_v26 }
  0x1b   :  { %368 = vmatpush3.bf16.msra.mxu0 %v420_v5  ;;  %387 = vmatprep.subr.bf16.mxu1 %v468_v2  ;;  %v63_v34 = vrot.slane %v55_v28, %v62_v29  ;;  %v73_v35 = vrot.slane %v55_v28, %v72_v31 }
  0x1c   :  { %369 = vmatprep.subr.bf16.mxu0 %v468_v2  ;;  %388 = vmatpush3.bf16.msra.mxu1 %v428_v13 }
  0x1d   :  { %389 = vmatprep.subr.bf16.mxu1 %v468_v2 }
  0x1e   :  { %418 = vset.pattern.permute.xlu0 %v470_v7 }
  0x1f   :  { %370 = vmatpush3.bf16.msra.mxu0 %v421_v8 }
  0x20   :  { %371 = vmatprep.subr.bf16.mxu0 %v468_v2  ;;  %390 = vmatpush3.bf16.msra.mxu1 %v429_v15 }
  0x21   :  { %391 = vmatprep.subr.bf16.mxu1 %v468_v2 }
  0x23   :  { %372 = vmatpush3.bf16.msra.mxu0 %v422_v9 }
  0x24   :  { %373 = vmatprep.subr.bf16.mxu0 %v468_v2  ;;  %392 = vmatpush3.bf16.msra.mxu1 %v430_v17 }
  0x25   :  { %393 = vmatprep.subr.bf16.mxu1 %v468_v2 }
  0x27   :  { %374 = vmatpush3.bf16.msra.mxu0 %v423_v10 }
  0x28   :  { %375 = vmatprep.subr.bf16.mxu0 %v468_v2  ;;  %394 = vmatpush3.bf16.msra.mxu1 %v431_v18 }
  0x29   :  { %395 = vmatprep.subr.bf16.mxu1 %v468_v2 }
  0x2b   :  { %376 = vmatpush3.bf16.msra.mxu0 %v424_v11 }
  0x2c   :  { %377 = vmatprep.subr.bf16.mxu0 %v468_v2  ;;  %396 = vmatpush3.bf16.msra.mxu1 %v432_v19 }
  0x2d   :  { %397 = vmatprep.subr.bf16.mxu1 %v468_v2 }
  0x2f   :  { %378 = vmatpush3.bf16.msra.mxu0 %v425_v14 }
  0x30   :  { %379 = vmatprep.subr.bf16.mxu0 %v468_v2  ;;  %398 = vmatpush3.bf16.msra.mxu1 %v433_v49 }
  0x31   :  { %399 = vmatprep.subr.bf16.mxu1 %v468_v2 }
  0x33   :  { %380 = vmatpush3.bf16.msra.mxu0 %v426_v16 }
  0x34   :  { %400 = vmatpush3.bf16.msra.mxu1 %v434_v50 }
  0x94   :  { %v36_v27 = vpop.permute.xlu0 %35  ;;  %v58_v30 = vpop.permute.xlu1 %57 }
  0x95   :  { %v42_v38 = vmul.f32 %v41_v32, %v36_v27  ;;  %v64_v40 = vmul.f32 %v63_v34, %v58_v30 }
  0x99   :  { %v46_v36 = vpop.permute.xlu0 %45  ;;  %v68_v37 = vpop.permute.xlu1 %67 }
  0x9a   :  { %v52_v39 = vmul.f32 %v51_v33, %v46_v36  ;;  %v74_v42 = vmul.f32 %v73_v35, %v68_v37 }
  0x9c   :  { %v53_v41 = vadd.f32 %v52_v39, %v42_v38 }
  0x9e   :  { %v65_v43 = vadd.f32 %v64_v40, %v53_v41 }
  0xa0   :  { %v75_v45 = vadd.f32 %v74_v42, %v65_v43 }
  0xa2   :  { %v82_v46 = vadd.f32 %v325_v44, %v75_v45 }
  0xa4   :  { %v83_v47 = vmax.f32 %v82_v46, 0.0 }
  0xa6   :  { %v86_v48 = vpack.c.bf16 %v83_v47, %v83_v47 }
  0xa8   :  { %382 = vmatmul.mubr.bf16.vlgmr.msra.gmra.mrb[0].mxu0 %v86_v48 }
 0x17b   :  { %v192_v52 = vpop.f32.mrb[0].mxu0 }
 0x17c   :  { %v193_v53 = vadd.f32 %v327_v51, %v192_v52  ;;  %v383_v54 = vpop.f32.mrb[1].mxu0 }
 0x17d   :  { %v195_v55 = vpop.f32.mrb[2].mxu0 }
 0x17e   :  { %v198_v56 = vmax.f32 %v193_v53, 0.0  ;;  %v384_v57 = vpop.f32.mrb[3].mxu0 }
 0x180   :  { %v201_v58 = vpack.c.bf16 %v198_v56, %v198_v56 }
 0x182   :  { %402 = vmatmul.mubr.bf16.vlgmr.msra.gmra.mrb[0].mxu1 %v201_v58 }
 0x255   :  { %v307_v60 = vpop.f32.mrb[0].mxu1 }
 0x256   :  { %v308_v61 = vadd.f32 %v337_v59, %v307_v60  ;;  %v403_v62 = vpop.f32.mrb[1].mxu1 }
 0x257   :  { %v310_v63 = vpop.f32.mrb[2].mxu1 }
 0x258   :  { %v346_v0 = vmul.f32 -1.442695, %v308_v61  ;;  %v404_v1 = vpop.f32.mrb[3].mxu1 }
 0x25a   :  { %435 = vpow2.f32 %v346_v0 }
 0x264   :  { %v436_v2 = vpop.eup %435 }
 0x265   :  { %v316_v3 = vadd.f32 1.0, %v436_v2 }
 0x267   :  { %437 = vrcp.f32 %v316_v3 }
 0x271   :  { %v438_v4 = vpop.eup %437 }
 0x272   :  { %319 = vst [vmem:[%s540_s3] sm:$0xff] %v438_v4 }
 0x273   :  { %324 = vsyncpa [#allocation3], 1 }

</bundles_post_ra>
